<compile_context>
chip_gen: v7x
topology: tpu7x:2x2x1
jax: 0.10.0
libtpu: 0.0.40
codegen_flags: <defaults>
</compile_context>

<pallas_src>
import jax
import jax.numpy as jnp
from jax.experimental import pallas as pl
from jax.experimental.pallas import tpu as pltpu


def _round_up(n, m):
    return ((n + m - 1) // m) * m


def _sigmoid(z):
    # Numerically robust sigmoid: exp of a non-positive argument (EUP, never
    # overflows) and an approximate reciprocal (EUP) instead of a VPU divide.
    e = jnp.exp(-jnp.abs(z))
    r = pl.reciprocal(1.0 + e, approx=True)
    return jnp.where(z >= 0, r, e * r)


def _discriminator_kernel(params_ref, xT_ref, o_ref):
    """params_ref: SMEM (19,) f32 = [W1.T row-major (3x4), b1 (3), w2 (3), b2 (1)]
    xT_ref:     VMEM (4, TB) f32   -- batch on the lane axis
    o_ref:      VMEM (1, TB) f32
    """
    # Load each input-feature row once (lane-dense (1, TB) vectors).
    x_rows = [xT_ref[k:k + 1, :] for k in range(4)]

    # ---- Layer 1: Linear(4, 3) + Sigmoid -- 12 unrolled VPU FMAs ----
    h = []
    for j in range(3):
        z = x_rows[0] * params_ref[4 * j + 0]
        for k in range(1, 4):
            z = z + x_rows[k] * params_ref[4 * j + k]
        z = z + params_ref[12 + j]          # b1[j]
        h.append(_sigmoid(z))               # (1, TB)

    # ---- Layer 2: Linear(3, 1) + Sigmoid -- 3 unrolled VPU FMAs ----
    z2 = h[0] * params_ref[15] + h[1] * params_ref[16] + h[2] * params_ref[17]
    z2 = z2 + params_ref[18]                # b2
    o_ref[...] = _sigmoid(z2)               # (1, TB), lane-dense store


def discriminator_forward(x, w1, b1, w2, b2, *, block_b=2048):
    """x: (B, 4) f32; w1: (4, 3); b1: (3,); w2: (3, 1); b2: (1,).
    Returns (B, 1) f32 = sigmoid(sigmoid(x @ w1 + b1) @ w2 + b2)."""
    B = x.shape[0]

    # Lane-dense batch tiling: block size is a multiple of 128 lanes.
    block_b = _round_up(block_b, 128)
    tb = min(block_b, _round_up(B, 128))
    Bp = _round_up(B, tb)

    # Transposed, lane-dense input: (4, B) padded to (4, Bp).
    xT = jnp.transpose(x.astype(jnp.float32))
    if Bp != B:
        xT = jnp.pad(xT, ((0, 0), (0, Bp - B)))

    # Pack the 19 parameters into one 1-D f32 array for SMEM residence.
    #   params[4*j + k] = W1[k, j]  (PyTorch (out,in) layout = w1.T)
    #   params[12 + j]  = b1[j]
    #   params[15 + j]  = w2[j, 0]
    #   params[18]      = b2
    params = jnp.concatenate([
        jnp.transpose(w1).reshape(-1),
        jnp.reshape(b1, (-1,)),
        jnp.reshape(w2, (-1,)),
        jnp.reshape(b2, (-1,)),
    ]).astype(jnp.float32)

    grid = (Bp // tb,)
    out_t = pl.pallas_call(
        _discriminator_kernel,
        out_shape=jax.ShapeDtypeStruct((1, Bp), jnp.float32),
        grid_spec=pltpu.PrefetchScalarGridSpec(
            num_scalar_prefetch=0,
            grid=grid,
            in_specs=[
                # 19 scalar params: whole array in SMEM (no padded VMEM tile).
                pl.BlockSpec(memory_space=pltpu.MemorySpace.SMEM),
                # Lane-dense batch blocks of the transposed input.
                pl.BlockSpec((4, tb), lambda i: (0, i)),
            ],
            out_specs=pl.BlockSpec((1, tb), lambda i: (0, i)),
        ),
        compiler_params=pltpu.CompilerParams(
            dimension_semantics=("parallel",),   # megacore sharding on v7x
        ),
    )(params, xT)

    # (1, Bp) -> (B, 1); drop batch padding.
    return jnp.transpose(out_t[:, :B])


def discriminator_forward_ref(x, w1, b1, w2, b2):
    """Pure-JAX reference for correctness checking."""
    h = jax.nn.sigmoid(x @ w1 + b1)
    return jax.nn.sigmoid(h @ w2 + b2)


if __name__ == "__main__":
    key = jax.random.PRNGKey(0)
    k_x, k_w1, k_b1, k_w2, k_b2, k_x2 = jax.random.split(key, 6)

    # Parameters with nn.Linear(4, 3) / nn.Linear(3, 1) shapes, stored (in, out).
    w1 = jax.random.uniform(k_w1, (4, 3), minval=-0.5, maxval=0.5, dtype=jnp.float32)
    b1 = jax.random.uniform(k_b1, (3,), minval=-0.5, maxval=0.5, dtype=jnp.float32)
    w2 = jax.random.uniform(k_w2, (3, 1), minval=-0.5, maxval=0.5, dtype=jnp.float32)
    b2 = jax.random.uniform(k_b2, (1,), minval=-0.5, maxval=0.5, dtype=jnp.float32)

    # Small batch (matches the toy GAN usage): single lane-dense block.
    x = jax.random.normal(k_x, (8, 4), dtype=jnp.float32)
    out = jax.block_until_ready(discriminator_forward(x, w1, b1, w2, b2))
    ref = discriminator_forward_ref(x, w1, b1, w2, b2)
    assert out.shape == (8, 1), out.shape
    assert jnp.allclose(out, ref, atol=2e-3, rtol=0.0), (out, ref)

    # Non-multiple-of-128 batch exercising padding + a multi-block parallel grid.
    x2 = jax.random.normal(k_x2, (257, 4), dtype=jnp.float32)
    out2 = jax.block_until_ready(
        discriminator_forward(x2, w1, b1, w2, b2, block_b=128))
    ref2 = discriminator_forward_ref(x2, w1, b1, w2, b2)
    assert out2.shape == (257, 1), out2.shape
    assert jnp.allclose(out2, ref2, atol=2e-3, rtol=0.0), (out2, ref2)

    print("KERNEL_OK")
</pallas_src>

<mosaic_0001>
module attributes {stable_mosaic.version = 11 : i64} {
  func.func @_discriminator_kernel(%arg0: i32, %arg1: memref<19xf32, #tpu.memory_space<smem>>, %arg2: memref<4x128xf32, #tpu.memory_space<vmem>>, %arg3: memref<1x128xf32, #tpu.memory_space<vmem>>) attributes {dimension_semantics = [#tpu.dimension_semantics<parallel>], iteration_bounds = array<i64: 1>, scalar_prefetch = 0 : i64, scratch_operands = 0 : i64, tpu.core_type = #tpu.core_type<tc>, window_params = [{transform_indices = @transform_0, window_bounds = array<i64: 19>}, {transform_indices = @transform_1, window_bounds = array<i64: 4, 128>}, {transform_indices = @transform_2, window_bounds = array<i64: 1, 128>}]} {
    %c0 = arith.constant 0 : index
    %c0_0 = arith.constant 0 : index
    %0 = vector.load %arg2[%c0, %c0_0] : memref<4x128xf32, #tpu.memory_space<vmem>>, vector<1x128xf32>
    %c1 = arith.constant 1 : index
    %c0_1 = arith.constant 0 : index
    %1 = vector.load %arg2[%c1, %c0_1] : memref<4x128xf32, #tpu.memory_space<vmem>>, vector<1x128xf32>
    %c2 = arith.constant 2 : index
    %c0_2 = arith.constant 0 : index
    %2 = vector.load %arg2[%c2, %c0_2] : memref<4x128xf32, #tpu.memory_space<vmem>>, vector<1x128xf32>
    %c3 = arith.constant 3 : index
    %c0_3 = arith.constant 0 : index
    %3 = vector.load %arg2[%c3, %c0_3] : memref<4x128xf32, #tpu.memory_space<vmem>>, vector<1x128xf32>
    %c0_4 = arith.constant 0 : index
    %4 = memref.load %arg1[%c0_4] : memref<19xf32, #tpu.memory_space<smem>>
    %5 = vector.broadcast %4 : f32 to vector<1x128xf32>
    %6 = arith.mulf %0, %5 : vector<1x128xf32>
    %c1_5 = arith.constant 1 : index
    %7 = memref.load %arg1[%c1_5] : memref<19xf32, #tpu.memory_space<smem>>
    %8 = vector.broadcast %7 : f32 to vector<1x128xf32>
    %9 = arith.mulf %1, %8 : vector<1x128xf32>
    %10 = arith.addf %6, %9 : vector<1x128xf32>
    %c2_6 = arith.constant 2 : index
    %11 = memref.load %arg1[%c2_6] : memref<19xf32, #tpu.memory_space<smem>>
    %12 = vector.broadcast %11 : f32 to vector<1x128xf32>
    %13 = arith.mulf %2, %12 : vector<1x128xf32>
    %14 = arith.addf %10, %13 : vector<1x128xf32>
    %c3_7 = arith.constant 3 : index
    %15 = memref.load %arg1[%c3_7] : memref<19xf32, #tpu.memory_space<smem>>
    %16 = vector.broadcast %15 : f32 to vector<1x128xf32>
    %17 = arith.mulf %3, %16 : vector<1x128xf32>
    %18 = arith.addf %14, %17 : vector<1x128xf32>
    %c12 = arith.constant 12 : index
    %19 = memref.load %arg1[%c12] : memref<19xf32, #tpu.memory_space<smem>>
    %20 = vector.broadcast %19 : f32 to vector<1x128xf32>
    %21 = arith.addf %18, %20 : vector<1x128xf32>
    %22 = math.absf %21 : vector<1x128xf32>
    %cst = arith.constant 0.000000e+00 : f32
    %23 = vector.broadcast %cst : f32 to vector<1x128xf32>
    %24 = arith.subf %23, %22 : vector<1x128xf32>
    %25 = math.exp %24 : vector<1x128xf32>
    %cst_8 = arith.constant 1.000000e+00 : f32
    %26 = vector.broadcast %cst_8 : f32 to vector<1x128xf32>
    %27 = arith.addf %26, %25 : vector<1x128xf32>
    %28 = tpu.reciprocal %27 {approx = true} : vector<1x128xf32> -> vector<1x128xf32>
    %cst_9 = arith.constant 0.000000e+00 : f32
    %29 = vector.broadcast %cst_9 : f32 to vector<1x128xf32>
    %30 = arith.cmpf oge, %21, %29 : vector<1x128xf32>
    %31 = arith.mulf %25, %28 : vector<1x128xf32>
    %32 = arith.select %30, %28, %31 : vector<1x128xi1>, vector<1x128xf32>
    %c4 = arith.constant 4 : index
    %33 = memref.load %arg1[%c4] : memref<19xf32, #tpu.memory_space<smem>>
    %34 = vector.broadcast %33 : f32 to vector<1x128xf32>
    %35 = arith.mulf %0, %34 : vector<1x128xf32>
    %c5 = arith.constant 5 : index
    %36 = memref.load %arg1[%c5] : memref<19xf32, #tpu.memory_space<smem>>
    %37 = vector.broadcast %36 : f32 to vector<1x128xf32>
    %38 = arith.mulf %1, %37 : vector<1x128xf32>
    %39 = arith.addf %35, %38 : vector<1x128xf32>
    %c6 = arith.constant 6 : index
    %40 = memref.load %arg1[%c6] : memref<19xf32, #tpu.memory_space<smem>>
    %41 = vector.broadcast %40 : f32 to vector<1x128xf32>
    %42 = arith.mulf %2, %41 : vector<1x128xf32>
    %43 = arith.addf %39, %42 : vector<1x128xf32>
    %c7 = arith.constant 7 : index
    %44 = memref.load %arg1[%c7] : memref<19xf32, #tpu.memory_space<smem>>
    %45 = vector.broadcast %44 : f32 to vector<1x128xf32>
    %46 = arith.mulf %3, %45 : vector<1x128xf32>
    %47 = arith.addf %43, %46 : vector<1x128xf32>
    %c13 = arith.constant 13 : index
    %48 = memref.load %arg1[%c13] : memref<19xf32, #tpu.memory_space<smem>>
    %49 = vector.broadcast %48 : f32 to vector<1x128xf32>
    %50 = arith.addf %47, %49 : vector<1x128xf32>
    %51 = math.absf %50 : vector<1x128xf32>
    %cst_10 = arith.constant 0.000000e+00 : f32
    %52 = vector.broadcast %cst_10 : f32 to vector<1x128xf32>
    %53 = arith.subf %52, %51 : vector<1x128xf32>
    %54 = math.exp %53 : vector<1x128xf32>
    %cst_11 = arith.constant 1.000000e+00 : f32
    %55 = vector.broadcast %cst_11 : f32 to vector<1x128xf32>
    %56 = arith.addf %55, %54 : vector<1x128xf32>
    %57 = tpu.reciprocal %56 {approx = true} : vector<1x128xf32> -> vector<1x128xf32>
    %cst_12 = arith.constant 0.000000e+00 : f32
    %58 = vector.broadcast %cst_12 : f32 to vector<1x128xf32>
    %59 = arith.cmpf oge, %50, %58 : vector<1x128xf32>
    %60 = arith.mulf %54, %57 : vector<1x128xf32>
    %61 = arith.select %59, %57, %60 : vector<1x128xi1>, vector<1x128xf32>
    %c8 = arith.constant 8 : index
    %62 = memref.load %arg1[%c8] : memref<19xf32, #tpu.memory_space<smem>>
    %63 = vector.broadcast %62 : f32 to vector<1x128xf32>
    %64 = arith.mulf %0, %63 : vector<1x128xf32>
    %c9 = arith.constant 9 : index
    %65 = memref.load %arg1[%c9] : memref<19xf32, #tpu.memory_space<smem>>
    %66 = vector.broadcast %65 : f32 to vector<1x128xf32>
    %67 = arith.mulf %1, %66 : vector<1x128xf32>
    %68 = arith.addf %64, %67 : vector<1x128xf32>
    %c10 = arith.constant 10 : index
    %69 = memref.load %arg1[%c10] : memref<19xf32, #tpu.memory_space<smem>>
    %70 = vector.broadcast %69 : f32 to vector<1x128xf32>
    %71 = arith.mulf %2, %70 : vector<1x128xf32>
    %72 = arith.addf %68, %71 : vector<1x128xf32>
    %c11 = arith.constant 11 : index
    %73 = memref.load %arg1[%c11] : memref<19xf32, #tpu.memory_space<smem>>
    %74 = vector.broadcast %73 : f32 to vector<1x128xf32>
    %75 = arith.mulf %3, %74 : vector<1x128xf32>
    %76 = arith.addf %72, %75 : vector<1x128xf32>
    %c14 = arith.constant 14 : index
    %77 = memref.load %arg1[%c14] : memref<19xf32, #tpu.memory_space<smem>>
    %78 = vector.broadcast %77 : f32 to vector<1x128xf32>
    %79 = arith.addf %76, %78 : vector<1x128xf32>
    %80 = math.absf %79 : vector<1x128xf32>
    %cst_13 = arith.constant 0.000000e+00 : f32
    %81 = vector.broadcast %cst_13 : f32 to vector<1x128xf32>
    %82 = arith.subf %81, %80 : vector<1x128xf32>
    %83 = math.exp %82 : vector<1x128xf32>
    %cst_14 = arith.constant 1.000000e+00 : f32
    %84 = vector.broadcast %cst_14 : f32 to vector<1x128xf32>
    %85 = arith.addf %84, %83 : vector<1x128xf32>
    %86 = tpu.reciprocal %85 {approx = true} : vector<1x128xf32> -> vector<1x128xf32>
    %cst_15 = arith.constant 0.000000e+00 : f32
    %87 = vector.broadcast %cst_15 : f32 to vector<1x128xf32>
    %88 = arith.cmpf oge, %79, %87 : vector<1x128xf32>
    %89 = arith.mulf %83, %86 : vector<1x128xf32>
    %90 = arith.select %88, %86, %89 : vector<1x128xi1>, vector<1x128xf32>
    %c15 = arith.constant 15 : index
    %91 = memref.load %arg1[%c15] : memref<19xf32, #tpu.memory_space<smem>>
    %92 = vector.broadcast %91 : f32 to vector<1x128xf32>
    %93 = arith.mulf %32, %92 : vector<1x128xf32>
    %c16 = arith.constant 16 : index
    %94 = memref.load %arg1[%c16] : memref<19xf32, #tpu.memory_space<smem>>
    %95 = vector.broadcast %94 : f32 to vector<1x128xf32>
    %96 = arith.mulf %61, %95 : vector<1x128xf32>
    %97 = arith.addf %93, %96 : vector<1x128xf32>
    %c17 = arith.constant 17 : index
    %98 = memref.load %arg1[%c17] : memref<19xf32, #tpu.memory_space<smem>>
    %99 = vector.broadcast %98 : f32 to vector<1x128xf32>
    %100 = arith.mulf %90, %99 : vector<1x128xf32>
    %101 = arith.addf %97, %100 : vector<1x128xf32>
    %c18 = arith.constant 18 : index
    %102 = memref.load %arg1[%c18] : memref<19xf32, #tpu.memory_space<smem>>
    %103 = vector.broadcast %102 : f32 to vector<1x128xf32>
    %104 = arith.addf %101, %103 : vector<1x128xf32>
    %105 = math.absf %104 : vector<1x128xf32>
    %cst_16 = arith.constant 0.000000e+00 : f32
    %106 = vector.broadcast %cst_16 : f32 to vector<1x128xf32>
    %107 = arith.subf %106, %105 : vector<1x128xf32>
    %108 = math.exp %107 : vector<1x128xf32>
    %cst_17 = arith.constant 1.000000e+00 : f32
    %109 = vector.broadcast %cst_17 : f32 to vector<1x128xf32>
    %110 = arith.addf %109, %108 : vector<1x128xf32>
    %111 = tpu.reciprocal %110 {approx = true} : vector<1x128xf32> -> vector<1x128xf32>
    %cst_18 = arith.constant 0.000000e+00 : f32
    %112 = vector.broadcast %cst_18 : f32 to vector<1x128xf32>
    %113 = arith.cmpf oge, %104, %112 : vector<1x128xf32>
    %114 = arith.mulf %108, %111 : vector<1x128xf32>
    %115 = arith.select %113, %111, %114 : vector<1x128xi1>, vector<1x128xf32>
    %c0_19 = arith.constant 0 : index
    %c0_20 = arith.constant 0 : index
    %116 = vector.load %arg3[%c0_19, %c0_20] : memref<1x128xf32, #tpu.memory_space<vmem>>, vector<1x128xf32>
    tpu.vector_store %arg3[%c0_19, %c0_20], %115 {strides = array<i32>} : memref<1x128xf32, #tpu.memory_space<vmem>>, vector<1x128xf32>,
    return
  }
  func.func @transform_0(%arg0: i32) -> i32 {
    %c0_i32 = arith.constant 0 : i32
    %c0_i32_0 = arith.constant 0 : i32
    return %c0_i32 : i32
  }
  func.func @transform_1(%arg0: i32) -> (i32, i32) {
    %c0_i32 = arith.constant 0 : i32
    %c0_i32_0 = arith.constant 0 : i32
    return %c0_i32, %arg0 : i32, i32
  }
  func.func @transform_2(%arg0: i32) -> (i32, i32) {
    %c0_i32 = arith.constant 0 : i32
    %c0_i32_0 = arith.constant 0 : i32
    return %c0_i32, %arg0 : i32, i32
  }
}

</mosaic_0001>

<bundles_post_ra>
// kernel: tpu_custom_call.1
= control target key start
LH: loop header
LB: loop body
LE: loop exit
PB: predicated region body
PF: predicated region fallthrough
CT: control target
= control target key end

     0   :  { %7 = vsyncpa [#allocation5], 0  ;;  %s320_s0 = inlined_call_operand.hbm [shape: f32[19], index: 0, kind: input, shape index: {}]   ;;  %s321_s1 = inlined_call_operand.hbm [shape: f32[4,128], index: 1, kind: input, shape index: {}]   ;;  %s322_s2 = inlined_call_operand.hbm [shape: f32[1,128], index: 2, kind: output, shape index: {}]  }
   0x1   :  { %8 = vsyncpa [#allocation3], 0 }
   0x2   :  { %9 = vsyncpa [#allocation4], 0  ;;  %s197_s11 = scalar_lea.hbm %s320_s0, 16 }
   0x3   :  { %p198_p0 = scmp.ne.s32.totalorder %s320_s0, %s197_s11  ;;  %p201_p1 = scmp.lt.u32.totalorder %s197_s11, %s320_s0 }
   0x5   :  { %p203_p2 = pnand %p201_p1, %p198_p0 }
   0x7   :  { %206 = shalt.err (!%p203_p2)
}
   0x8   :  { %s257_s16 = smov [#allocation2]   ;;  %s258_s19 = smov [#allocation6]  }
   0x9   :  { %17 = dma.hbm_to_smem %s320_s0, 16, %s257_s16, [#allocation5]  }
   0xa   :  { %s24_s20 = sshll.u32 %s258_s19, 4  ;;  %s207_s23 = scalar_lea.hbm %s321_s1, 64  ;;  %s25_s20 = int_to_ptr.vmem [resolvable:$true] %s24_s20 }
   0xb   :  { %p208_p3 = scmp.ne.s32.totalorder %s321_s1, %s207_s23  ;;  %p211_p4 = scmp.lt.u32.totalorder %s207_s23, %s321_s1 }
   0xd   :  { %p213_p5 = pnand %p211_p4, %p208_p3 }
   0xf   :  { %216 = shalt.err (!%p213_p5)
}
  0x10   :  { %s217_s28 = scalar_lea.vmem %s25_s20, 64  ;;  %p222_p7 = scmp.lt.s32.totalorder %s25_s20, %s25_s20 }
  0x11   :  { %p218_p6 = scmp.ne.s32.totalorder %s25_s20, %s217_s28  ;;  %p223_p8 = scmp.lt.s32.totalorder %s217_s28, %s217_s28 }
  0x13   :  { %p224_p9 = por %p223_p8, %p222_p7 }
  0x15   :  { %p225_p10 = pnand %p224_p9, %p218_p6 }
  0x17   :  { %228 = shalt.err (!%p225_p10)
}
  0x18   :  { %27 = dma.hbm_to_vmem [thread:$0]  %s321_s1, 64, %s25_s20, [#allocation3]  }
  0x19   :  { %251 = dma.done.wait [#allocation5], 16  }
  0x1a   :  { %252 = vsyncadd [#allocation5], 4294967280 }
  0x1b   :  { %253 = dma.done.wait [#allocation3], 64  }
  0x1c   :  { %254 = vsyncadd [#allocation3], 4294967232 }
  0x1d   :  { %34 = sfence }
  0x1e   :  { %s39_s30 = sld [smem:[#allocation2]]  ;;  %s160_s3 = sld [smem:[#allocation2 + $0x1]]  ;;  %v35_v0 = vld [vmem:[#allocation6] sm:$0x1]  ;;  %v36_v1 = vld [vmem:[#allocation6 + $0x1] sm:$0x1] }
  0x1f   :  { %s161_s4 = sld [smem:[#allocation2 + $0x2]]  ;;  %s162_s5 = sld [smem:[#allocation2 + $0x3]]  ;;  %v37_v2 = vld [vmem:[#allocation6 + $0x2] sm:$0x1]  ;;  %v38_v3 = vld [vmem:[#allocation6 + $0x3] sm:$0x1] }
  0x20   :  { %s299_s6 = sld [smem:[#allocation2 + $0xc]]  ;;  %s165_s8 = sld [smem:[#allocation2 + $0x5]] }
  0x21   :  { %s164_s7 = sld [smem:[#allocation2 + $0x4]]  ;;  %s166_s9 = sld [smem:[#allocation2 + $0x6]] }
  0x22   :  { %s167_s10 = sld [smem:[#allocation2 + $0x7]]  ;;  %s169_s1 = sld [smem:[#allocation2 + $0x8]] }
  0x23   :  { %s170_s11 = sld [smem:[#allocation2 + $0x9]]  ;;  %s171_s12 = sld [smem:[#allocation2 + $0xa]] }
  0x24   :  { %v40_v4 = vstv %s39_s30  ;;  %v43_v5 = vstv %s160_s3  ;;  %s301_s13 = sld [smem:[#allocation2 + $0xb]]  ;;  %s303_s14 = sld [smem:[#allocation2 + $0xd]] }
  0x25   :  { %v41_v6 = vmul.f32 %v40_v4, %v35_v0  ;;  %v44_v7 = vmul.f32 %v43_v5, %v36_v1  ;;  %v47_v8 = vstv %s161_s4  ;;  %v51_v9 = vstv %s162_s5  ;;  %s173_s15 = sld [smem:[#allocation2 + $0xe]]  ;;  %s174_s16 = sld [smem:[#allocation2 + $0xf]] }
  0x26   :  { %v48_v10 = vmul.f32 %v47_v8, %v37_v2  ;;  %v52_v11 = vmul.f32 %v51_v9, %v38_v3  ;;  %v70_v15 = vstv %s165_s8  ;;  %v55_v17 = vstv %s299_s6  ;;  %s175_s17 = sld [smem:[#allocation2 + $0x10]]  ;;  %s176_s18 = sld [smem:[#allocation2 + $0x11]] }
  0x27   :  { %v67_v12 = vstv %s164_s7  ;;  %v45_v13 = vadd.f32 %v44_v7, %v41_v6  ;;  %v74_v16 = vstv %s166_s9  ;;  %v71_v18 = vmul.f32 %v70_v15, %v36_v1  ;;  %s177_s19 = sld [smem:[#allocation2 + $0x12]]  ;;  %s259_s20 = smov [#allocation7]  }
  0x28   :  { %v68_v14 = vmul.f32 %v67_v12, %v35_v0  ;;  %v75_v19 = vmul.f32 %v74_v16, %v37_v2  ;;  %v78_v20 = vstv %s167_s10  ;;  %v94_v23 = vstv %s169_s1  ;;  %s150_s21 = sshll.u32 %s259_s20, 4  ;;  %s151_s21 = int_to_ptr.vmem [resolvable:$true] %s150_s21 }
  0x29   :  { %v49_v21 = vadd.f32 %v48_v10, %v45_v13  ;;  %v79_v22 = vmul.f32 %v78_v20, %v38_v3  ;;  %v97_v24 = vstv %s170_s11  ;;  %v95_v26 = vmul.f32 %v94_v23, %v35_v0  ;;  %s229_s22 = scalar_lea.vmem %s151_s21, 16  ;;  %s233_s23 = scalar_lea.vmem %s151_s21, 32 }
  0x2a   :  { %v72_v25 = vadd.f32 %v71_v18, %v68_v14  ;;  %v98_v27 = vmul.f32 %v97_v24, %v36_v1  ;;  %v101_v28 = vstv %s171_s12  ;;  %v105_v31 = vstv %s301_s13  ;;  %p230_p11 = scmp.ne.s32.totalorder %s151_s21, %s229_s22  ;;  %p234_p12 = scmp.lt.s32.totalorder %s151_s21, %s151_s21 }
  0x2b   :  { %v53_v29 = vadd.f32 %v52_v11, %v49_v21  ;;  %v102_v30 = vmul.f32 %v101_v28, %v37_v2  ;;  %v106_v34 = vmul.f32 %v105_v31, %v38_v3  ;;  %v82_v36 = vstv %s303_s14  ;;  %p235_p13 = scmp.lt.s32.totalorder %s233_s23, %s229_s22 }
  0x2c   :  { %v76_v32 = vadd.f32 %v75_v19, %v72_v25  ;;  %v99_v33 = vadd.f32 %v98_v27, %v95_v26  ;;  %v109_v40 = vstv %s173_s15  ;;  %v121_v60 = vstv %s174_s16 }
  0x2d   :  { %v56_v35 = vadd.f32 %v55_v17, %v53_v29  ;;  %v124_v0 = vstv %s175_s17  ;;  %v128_v5 = vstv %s176_s18  ;;  %v132_v10 = vstv %s177_s19  ;;  %p236_p0 = por %p235_p13, %p234_p12 }
  0x2e   :  { %v80_v37 = vadd.f32 %v79_v22, %v76_v32  ;;  %v103_v38 = vadd.f32 %v102_v30, %v99_v33 }
  0x2f   :  { %v57_v39 = vand.u32 2147483647, %v56_v35  ;;  %vm63_vm0 = vcmp.ge.f32.partialorder %v56_v35, 0.0  ;;  %p237_p1 = pnand %p236_p0, %p230_p11 }
  0x30   :  { %v83_v41 = vadd.f32 %v82_v36, %v80_v37  ;;  %v107_v42 = vadd.f32 %v106_v34, %v103_v38 }
  0x31   :  { %v58_v43 = vsub.f32 0.0, %v57_v39 }
  0x32   :  { %v84_v44 = vand.u32 2147483647, %v83_v41  ;;  %v110_v45 = vadd.f32 %v109_v40, %v107_v42  ;;  %vm90_vm1 = vcmp.ge.f32.partialorder %v83_v41, 0.0 }
  0x33   :  { %v59_v46 = vmul.f32 1.442695, %v58_v43 }
  0x34   :  { %v85_v47 = vsub.f32 0.0, %v84_v44  ;;  %v111_v48 = vand.u32 2147483647, %v110_v45  ;;  %vm117_vm2 = vcmp.ge.f32.partialorder %v110_v45, 0.0 }
  0x35   :  { %181 = vpow2.f32 %v59_v46 }
  0x36   :  { %v86_v49 = vmul.f32 1.442695, %v85_v47  ;;  %v112_v50 = vsub.f32 0.0, %v111_v48 }
  0x38   :  { %183 = vpow2.f32 %v86_v49  ;;  %v113_v51 = vmul.f32 1.442695, %v112_v50 }
  0x3a   :  { %185 = vpow2.f32 %v113_v51 }
  0x3f   :  { %v182_v52 = vpop.eup %181 }
  0x40   :  { %v61_v53 = vadd.f32 1.0, %v182_v52 }
  0x42   :  { %v184_v54 = vpop.eup %183  ;;  %187 = vrcp.f32 %v61_v53 }
  0x43   :  { %v88_v55 = vadd.f32 1.0, %v184_v54 }
  0x44   :  { %v186_v56 = vpop.eup %185 }
  0x45   :  { %189 = vrcp.f32 %v88_v55  ;;  %v115_v57 = vadd.f32 1.0, %v186_v56 }
  0x47   :  { %191 = vrcp.f32 %v115_v57 }
  0x4c   :  { %v188_v58 = vpop.eup %187 }
  0x4d   :  { %v64_v59 = vmul.f32 %v188_v58, %v182_v52 }
  0x4f   :  { %v190_v61 = vpop.eup %189  ;;  %v65_v62 = vsel %vm63_vm0, %v188_v58, %v64_v59 }
  0x50   :  { %v91_v63 = vmul.f32 %v190_v61, %v184_v54  ;;  %v122_v2 = vmul.f32 %v121_v60, %v65_v62 }
  0x51   :  { %v192_v1 = vpop.eup %191 }
  0x52   :  { %v92_v3 = vsel %vm90_vm1, %v190_v61, %v91_v63  ;;  %v118_v4 = vmul.f32 %v192_v1, %v186_v56 }
  0x53   :  { %v125_v6 = vmul.f32 %v124_v0, %v92_v3 }
  0x54   :  { %v119_v7 = vsel %vm117_vm2, %v192_v1, %v118_v4 }
  0x55   :  { %v126_v8 = vadd.f32 %v125_v6, %v122_v2  ;;  %v129_v9 = vmul.f32 %v128_v5, %v119_v7 }
  0x57   :  { %v130_v11 = vadd.f32 %v129_v9, %v126_v8 }
  0x59   :  { %v133_v12 = vadd.f32 %v132_v10, %v130_v11 }
  0x5b   :  { %v134_v13 = vand.u32 2147483647, %v133_v12  ;;  %vm140_vm3 = vcmp.ge.f32.partialorder %v133_v12, 0.0 }
  0x5d   :  { %v135_v14 = vsub.f32 0.0, %v134_v13 }
  0x5f   :  { %v136_v15 = vmul.f32 1.442695, %v135_v14 }
  0x61   :  { %193 = vpow2.f32 %v136_v15 }
  0x6b   :  { %v194_v16 = vpop.eup %193 }
  0x6c   :  { %v138_v17 = vadd.f32 1.0, %v194_v16 }
  0x6e   :  { %195 = vrcp.f32 %v138_v17 }
  0x78   :  { %v196_v18 = vpop.eup %195 }
  0x79   :  { %v141_v19 = vmul.f32 %v196_v18, %v194_v16 }
  0x7b   :  { %v142_v20 = vsel %vm140_vm3, %v196_v18, %v141_v19 }
  0x7c   :  { %143 = vst [vmem:[#allocation7] sm:$0x1] %v142_v20 }
  0x7d   :  { %240 = shalt.err (!%p237_p1)
}
  0x7e   :  { %s241_s26 = scalar_lea.hbm %s322_s2, 16 }
  0x7f   :  { %p242_p2 = scmp.ne.s32.totalorder %s322_s2, %s241_s26  ;;  %p245_p3 = scmp.lt.u32.totalorder %s241_s26, %s322_s2 }
  0x81   :  { %p247_p4 = pnand %p245_p3, %p242_p2 }
  0x83   :  { %250 = shalt.err (!%p247_p4)
}
  0x84   :  { %153 = dma.vmem_to_hbm [thread:$0]  %s151_s21, 16, %s322_s2, [#allocation4]  }
  0x85   :  { %255 = dma.done.wait [#allocation4], 16  }
  0x86   :  { %256 = vsyncadd [#allocation4], 4294967280 }
  0x87   :  { %157 = vsyncpa [#allocation3], 1 }
  0x88   :  { %158 = vsyncpa [#allocation4], 1 }
  0x89   :  { %159 = vsyncpa [#allocation5], 1 }

</bundles_post_ra>
